<compile_context>
chip_gen: v7x
topology: tpu7x:2x2x1
jax: 0.10.0
libtpu: 0.0.40
codegen_flags: <defaults>
</compile_context>

<pallas_src>
import functools

import jax
import jax.numpy as jnp
from jax.experimental import pallas as pl
from jax.experimental.pallas import tpu as pltpu


def _round_up(x, m):
    return ((x + m - 1) // m) * m


def _vmem_capacity_bytes():
    """Physical VMEM capacity of the current chip (conservative fallback: v7x 64 MiB)."""
    try:
        info = pltpu.get_tpu_info()
        cap = getattr(info, "vmem_capacity_bytes", None)
        if cap:
            return int(cap)
    except Exception:
        pass
    return 64 << 20


def _largest_tile(total, cap):
    """Largest multiple of 128 that divides `total` (itself a multiple of 128) and is <= cap."""
    m = total // 128
    q_max = max(cap // 128, 1)
    best = 1
    for q in range(1, q_max + 1):
        if m % q == 0:
            best = q
    return 128 * best


# ----------------------------- Pallas kernels --------------------------------

def _gcn_layer_kernel(a_ref, h_ref, w_ref, b_ref, o_ref, acc_ref, *, apply_relu):
    """One GCNConv layer; grid = (row tiles, contraction tiles).

    a_ref: (TM, TK)  bf16 tile of the normalized adjacency (rows = destinations)
    h_ref: (TK, Hin) bf16 tile of previous-layer node features
    w_ref: (Hin, Hout) bf16,  b_ref: (1, Hout) f32
    o_ref: (TM, Hout) bf16 (resident across the contraction axis)
    acc_ref: (TM, Hin) f32 accumulator scratch
    """
    f32 = jnp.float32
    k = pl.program_id(1)

    @pl.when(k == 0)
    def _():
        acc_ref[...] = jnp.zeros_like(acc_ref)

    # Streamed contraction: accumulate A_tile @ H_tile in f32.
    acc_ref[...] += jnp.dot(a_ref[...], h_ref[...], preferred_element_type=f32)

    @pl.when(k == pl.num_programs(1) - 1)
    def _():
        # Finalize once per row tile: (A @ H) @ W + b, epilogue in f32.
        out = jnp.dot(acc_ref[...].astype(jnp.bfloat16), w_ref[...],
                      preferred_element_type=f32) + b_ref[...]
        if apply_relu:
            out = jnp.maximum(out, 0.0)
        o_ref[...] = out.astype(o_ref.dtype)   # downcast only at the store (feeds bf16 dot)


def _pool_linear_kernel(p_ref, h_ref, wl_ref, bl_ref, o_ref, acc_ref):
    """global_mean_pool (P @ h, P rows hold 1/|graph|) + Linear; grid over node chunks."""
    f32 = jnp.float32
    k = pl.program_id(0)

    @pl.when(k == 0)
    def _():
        acc_ref[...] = jnp.zeros_like(acc_ref)

    acc_ref[...] += jnp.dot(p_ref[...], h_ref[...], preferred_element_type=f32)   # (GP, HP)

    @pl.when(k == pl.num_programs(0) - 1)
    def _():
        # TODO(synk): F.dropout(p=0.5) is identity at inference; not emitted.
        o_ref[...] = jnp.dot(acc_ref[...].astype(jnp.bfloat16), wl_ref[...],
                             preferred_element_type=f32) + bl_ref[...]


def _fused_small_kernel(a_ref, x_ref, p_ref, w1_ref, b1_ref, w2_ref, b2_ref,
                        w3_ref, b3_ref, wl_ref, bl_ref, o_ref):
    """Whole forward for graphs whose padded problem fits in VMEM: A is read once."""
    bf, f32 = jnp.bfloat16, jnp.float32

    def conv(a, h, w_ref, b_ref, relu):
        ah = jnp.dot(a, h, preferred_element_type=f32)
        out = jnp.dot(ah.astype(bf), w_ref[...], preferred_element_type=f32) + b_ref[...]
        if relu:
            out = jnp.maximum(out, 0.0)
        return out.astype(bf)

    a = a_ref[...]
    h = conv(a, x_ref[...], w1_ref, b1_ref, True)
    h = conv(a, h, w2_ref, b2_ref, True)
    h = conv(a, h, w3_ref, b3_ref, False)
    pooled = jnp.dot(p_ref[...], h, preferred_element_type=f32)
    # TODO(synk): F.dropout(p=0.5) is identity at inference; not emitted.
    o_ref[...] = jnp.dot(pooled.astype(bf), wl_ref[...], preferred_element_type=f32) + bl_ref[...]


# --------------------------- pallas_call wrappers -----------------------------

def _gcn_layer(a_bf16, h_bf16, w_bf16, b_f32, *, relu, tm, tk, vmem_cap):
    np_, hin = h_bf16.shape
    hout = w_bf16.shape[1]

    # Exact per-buffer footprint: every BlockSpec operand gets 2 pipeline buffers
    # (grid-invariant ones included), plus the f32 accumulator scratch.
    nbytes = (2 * tm * tk * 2          # A tile, bf16
              + 2 * tk * hin * 2       # h tile, bf16
              + 2 * hin * hout * 2     # W, bf16
              + 2 * 1 * hout * 4       # bias, f32
              + 2 * tm * hout * 2      # output tile, bf16
              + tm * hin * 4)          # accumulator scratch, f32
    vmem_limit = min(max(nbytes + (4 << 20), 16 << 20), int(0.85 * vmem_cap))

    return pl.pallas_call(
        functools.partial(_gcn_layer_kernel, apply_relu=relu),
        out_shape=jax.ShapeDtypeStruct((np_, hout), jnp.bfloat16),
        grid_spec=pltpu.PrefetchScalarGridSpec(
            num_scalar_prefetch=0,
            grid=(np_ // tm, np_ // tk),
            in_specs=[pl.BlockSpec((tm, tk), lambda i, k: (i, k)),     # A tile (streamed)
                      pl.BlockSpec((tk, hin), lambda i, k: (k, 0)),    # h contraction tile
                      pl.BlockSpec((hin, hout), lambda i, k: (0, 0)),  # W
                      pl.BlockSpec((1, hout), lambda i, k: (0, 0))],   # b
            out_specs=pl.BlockSpec((tm, hout), lambda i, k: (i, 0)),
            scratch_shapes=[pltpu.VMEM((tm, hin), jnp.float32)]),
        compiler_params=pltpu.CompilerParams(
            dimension_semantics=("parallel", "arbitrary"),   # rows parallel (2 TCs on v7x)
            vmem_limit_bytes=vmem_limit),
    )(a_bf16, h_bf16, w_bf16, b_f32)


def _pool_linear(p_bf16, h_bf16, wl_bf16, bl_f32, *, tk, vmem_cap):
    gp, np_ = p_bf16.shape
    hp = h_bf16.shape[1]
    op = wl_bf16.shape[1]

    nbytes = (2 * gp * tk * 2 + 2 * tk * hp * 2 + 2 * hp * op * 2
              + 2 * 1 * op * 4 + 2 * gp * op * 4 + gp * hp * 4)
    vmem_limit = min(max(nbytes + (4 << 20), 16 << 20), int(0.85 * vmem_cap))

    return pl.pallas_call(
        _pool_linear_kernel,
        out_shape=jax.ShapeDtypeStruct((gp, op), jnp.float32),
        grid_spec=pltpu.PrefetchScalarGridSpec(
            num_scalar_prefetch=0,
            grid=(np_ // tk,),
            in_specs=[pl.BlockSpec((gp, tk), lambda k: (0, k)),
                      pl.BlockSpec((tk, hp), lambda k: (k, 0)),
                      pl.BlockSpec((hp, op), lambda k: (0, 0)),
                      pl.BlockSpec((1, op), lambda k: (0, 0))],
            out_specs=pl.BlockSpec((gp, op), lambda k: (0, 0)),
            scratch_shapes=[pltpu.VMEM((gp, hp), jnp.float32)]),
        compiler_params=pltpu.CompilerParams(
            dimension_semantics=("arbitrary",),
            vmem_limit_bytes=vmem_limit),
    )(p_bf16, h_bf16, wl_bf16, bl_f32)


def _fused_small(a_p, x_p, p_p, w1, b1, w2, b2, w3, b3, wl, bl, *, vmem_cap):
    gp = p_p.shape[0]
    op = wl.shape[1]
    np_, fp = x_p.shape
    hp = w1.shape[1]

    nbytes = (np_ * np_ * 2 + np_ * fp * 2 + gp * np_ * 2
              + (fp * hp + 2 * hp * hp + hp * op) * 2
              + 4 * hp * 4 + gp * op * 4
              + 4 * np_ * hp * 4)                       # headroom for h temporaries (f32)
    vmem_limit = min(max(nbytes + (4 << 20), 16 << 20), int(0.85 * vmem_cap))

    vmem_spec = pl.BlockSpec(memory_space=pltpu.MemorySpace.VMEM)
    return pl.pallas_call(
        _fused_small_kernel,
        out_shape=jax.ShapeDtypeStruct((gp, op), jnp.float32),
        in_specs=[vmem_spec] * 11,
        out_specs=vmem_spec,
        compiler_params=pltpu.CompilerParams(vmem_limit_bytes=vmem_limit),
    )(a_p, x_p, p_p, w1, b1, w2, b2, w3, b3, wl, bl)


def gcn_net_forward(a_norm, x, pool_mat, params, *, tile_rows=None, tile_cols=None,
                    force_tiled=False):
    """Fused GCN_Net forward (eval mode)."""
    n, f = x.shape
    g = pool_mat.shape[0]
    out_real = params["wl"].shape[1]
    h_real = params["w1"].shape[1]

    vmem_cap = _vmem_capacity_bytes()
    big_vmem = vmem_cap >= (100 << 20)                 # v5e/v6e (128 MiB) vs v7x (64 MiB)
    if tile_rows is None:
        tile_rows = 512 if big_vmem else 256
    if tile_cols is None:
        tile_cols = 512 if big_vmem else 256

    # ---- pad to lane/sublane friendly sizes (zero padding is numerically exact) ----
    np_ = _round_up(n, 128)                            # lane-dense node dimension
    fp = _round_up(f, 128)
    hp = _round_up(h_real, 128)
    op = _round_up(out_real, 128)
    gp = _round_up(g, 8)

    tm = _largest_tile(np_, tile_rows)                 # row tile (multiple of 128, divides np_)
    tk = _largest_tile(np_, tile_cols)                 # contraction tile

    def pad2(arr, r, c):
        return jnp.zeros((r, c), arr.dtype).at[:arr.shape[0], :arr.shape[1]].set(arr)

    a_p = pad2(a_norm, np_, np_).astype(jnp.bfloat16)
    x_p = pad2(x, np_, fp).astype(jnp.bfloat16)
    p_p = pad2(pool_mat, gp, np_).astype(jnp.bfloat16)

    w1 = pad2(params["w1"], fp, hp).astype(jnp.bfloat16)
    w2 = pad2(params["w2"], hp, hp).astype(jnp.bfloat16)
    w3 = pad2(params["w3"], hp, hp).astype(jnp.bfloat16)
    wl = pad2(params["wl"], hp, op).astype(jnp.bfloat16)
    b1 = pad2(params["b1"], 1, hp)
    b2 = pad2(params["b2"], 1, hp)
    b3 = pad2(params["b3"], 1, hp)
    bl = pad2(params["bl"], 1, op)

    # Small-graph fused path: A fits in VMEM -> read it once, no intermediate HBM round trips.
    fused_bytes = (np_ * np_ * 2 + np_ * fp * 2 + gp * np_ * 2
                   + (fp * hp + 2 * hp * hp + hp * op) * 2 + 4 * np_ * hp * 4)
    if (not force_tiled) and fused_bytes <= int(0.45 * vmem_cap):
        out = _fused_small(a_p, x_p, p_p, w1, b1, w2, b2, w3, b3, wl, bl, vmem_cap=vmem_cap)
        return out[:g, :out_real]

    # Large-graph tiled path. Padded node rows accumulate relu(bias) garbage, but A's / P's
    # padded columns are zero so they never contribute to real rows / pooled graphs.
    h = _gcn_layer(a_p, x_p, w1, b1, relu=True, tm=tm, tk=tk, vmem_cap=vmem_cap)   # conv1+relu
    h = _gcn_layer(a_p, h, w2, b2, relu=True, tm=tm, tk=tk, vmem_cap=vmem_cap)     # conv2+relu
    h = _gcn_layer(a_p, h, w3, b3, relu=False, tm=tm, tk=tk, vmem_cap=vmem_cap)    # conv3
    out = _pool_linear(p_p, h, wl, bl, tk=tk, vmem_cap=vmem_cap)                   # pool+linear
    return out[:g, :out_real]


# ------------------------------ Glue (plain JAX) -----------------------------

def build_normalized_adjacency(edge_index, num_nodes):
    """Dense GCN-normalized adjacency: D^{-1/2} (A + I) D^{-1/2}, rows = dst.

    Note: .set de-duplicates repeated edges (toy graphs here have none); PyG scatter-add
    would count multiplicities on multigraphs.
    """
    src, dst = edge_index[0], edge_index[1]
    a = jnp.zeros((num_nodes, num_nodes), jnp.float32).at[dst, src].set(1.0)
    a_hat = a + jnp.eye(num_nodes, dtype=jnp.float32)
    deg = a_hat.sum(axis=1)
    dinv = jnp.where(deg > 0, 1.0 / jnp.sqrt(deg), 0.0)
    return dinv[:, None] * a_hat * dinv[None, :]


def build_pool_matrix(batch, num_graphs):
    """P[g, n] = 1/count_g if batch[n] == g else 0  (global_mean_pool as a matmul)."""
    onehot = (batch[None, :] == jnp.arange(num_graphs)[:, None]).astype(jnp.float32)
    counts = jnp.maximum(onehot.sum(axis=1, keepdims=True), 1.0)
    return onehot / counts


def init_params(key, num_node_features, hidden_channels, output_channels):
    """Deterministic synthetic parameters (glorot-uniform-ish); biases zero."""
    ks = jax.random.split(key, 4)

    def glorot(k, fan_in, fan_out):
        lim = jnp.sqrt(6.0 / (fan_in + fan_out))
        return jax.random.uniform(k, (fan_in, fan_out), jnp.float32, -lim, lim)

    return {
        "w1": glorot(ks[0], num_node_features, hidden_channels),
        "b1": jnp.zeros((1, hidden_channels), jnp.float32),
        "w2": glorot(ks[1], hidden_channels, hidden_channels),
        "b2": jnp.zeros((1, hidden_channels), jnp.float32),
        "w3": glorot(ks[2], hidden_channels, hidden_channels),
        "b3": jnp.zeros((1, hidden_channels), jnp.float32),
        # PyTorch Linear stores (out, in); we store transposed (in, out) for x @ W.
        "wl": glorot(ks[3], hidden_channels, output_channels),
        "bl": jnp.zeros((1, output_channels), jnp.float32),
    }


def reference_forward(a_norm, x, pool_mat, p):
    """Pure-JAX reference matching the kernels' bf16-operand / f32-accumulate numerics."""
    bf, f32 = jnp.bfloat16, jnp.float32

    def mm(a, b):
        return jnp.dot(a.astype(bf), b.astype(bf), preferred_element_type=f32)

    h = jnp.maximum(mm(mm(a_norm, x), p["w1"]) + p["b1"], 0.0).astype(bf)
    h = jnp.maximum(mm(mm(a_norm, h), p["w2"]) + p["b2"], 0.0).astype(bf)
    h = (mm(mm(a_norm, h), p["w3"]) + p["b3"]).astype(bf)
    pooled = mm(pool_mat, h)
    return mm(pooled, p["wl"]) + p["bl"]


# --------------------------------- Driver ------------------------------------

if __name__ == "__main__":
    num_node_features = 4
    hidden_channels = 32
    output_channels = 2
    num_nodes = 8
    num_graphs = 2

    key = jax.random.PRNGKey(0)
    k_x, k_p = jax.random.split(key)

    # Node features (N, F)
    x = jax.random.normal(k_x, (num_nodes, num_node_features), jnp.float32)

    # Two small undirected 4-node ring graphs, edges in both directions.
    edges = []
    for base in (0, 4):
        for i in range(4):
            a_, b_ = base + i, base + (i + 1) % 4
            edges.append((a_, b_))
            edges.append((b_, a_))
    edge_index = jnp.asarray(edges, jnp.int32).T           # (2, E)
    batch = jnp.asarray([0, 0, 0, 0, 1, 1, 1, 1], jnp.int32)

    a_norm = build_normalized_adjacency(edge_index, num_nodes)
    pool_mat = build_pool_matrix(batch, num_graphs)
    params = init_params(k_p, num_node_features, hidden_channels, output_channels)

    ref = reference_forward(a_norm, x, pool_mat, params)

    # Fused (single pallas_call) path — auto-selected for in-VMEM graphs.
    out_fused = gcn_net_forward(a_norm, x, pool_mat, params)
    out_fused = jax.block_until_ready(out_fused)
    assert out_fused.shape == (num_graphs, output_channels)
    assert jnp.allclose(out_fused, ref, atol=1e-3, rtol=1e-3), (out_fused, ref)

    # Tiled per-layer path (contraction-tiled, accumulator scratch) — large-graph code path.
    out_tiled = gcn_net_forward(a_norm, x, pool_mat, params, force_tiled=True)
    out_tiled = jax.block_until_ready(out_tiled)
    assert out_tiled.shape == (num_graphs, output_channels)
    assert jnp.allclose(out_tiled, ref, atol=1e-3, rtol=1e-3), (out_tiled, ref)
    assert jnp.allclose(out_tiled, out_fused, atol=1e-3, rtol=1e-3)

    print("KERNEL_OK")
</pallas_src>

<mosaic_0001>
module attributes {stable_mosaic.version = 11 : i64} {
  func.func @_fused_small_kernel(%arg0: memref<128x128xbf16, #tpu.memory_space<vmem>>, %arg1: memref<128x128xbf16, #tpu.memory_space<vmem>>, %arg2: memref<8x128xbf16, #tpu.memory_space<vmem>>, %arg3: memref<128x128xbf16, #tpu.memory_space<vmem>>, %arg4: memref<1x128xf32, #tpu.memory_space<vmem>>, %arg5: memref<128x128xbf16, #tpu.memory_space<vmem>>, %arg6: memref<1x128xf32, #tpu.memory_space<vmem>>, %arg7: memref<128x128xbf16, #tpu.memory_space<vmem>>, %arg8: memref<1x128xf32, #tpu.memory_space<vmem>>, %arg9: memref<128x128xbf16, #tpu.memory_space<vmem>>, %arg10: memref<1x128xf32, #tpu.memory_space<vmem>>, %arg11: memref<8x128xf32, #tpu.memory_space<vmem>>) attributes {dimension_semantics = [], scalar_prefetch = 0 : i64, scratch_operands = 0 : i64, tpu.core_type = #tpu.core_type<tc>} {
    %c0 = arith.constant 0 : index
    %c0_0 = arith.constant 0 : index
    %0 = vector.load %arg0[%c0, %c0_0] : memref<128x128xbf16, #tpu.memory_space<vmem>>, vector<128x128xbf16>
    %c0_1 = arith.constant 0 : index
    %c0_2 = arith.constant 0 : index
    %1 = vector.load %arg1[%c0_1, %c0_2] : memref<128x128xbf16, #tpu.memory_space<vmem>>, vector<128x128xbf16>
    %cst = arith.constant dense<0.000000e+00> : vector<128x128xf32>
    %2 = tpu.matmul %0, %1, %cst {dimension_numbers = #tpu.dot_dimension_numbers<[1], [0], [0], [1], [0, 0, 1, 1], [], []>} : vector<128x128xbf16>, vector<128x128xbf16>, vector<128x128xf32> -> vector<128x128xf32>
    %3 = arith.truncf %2 : vector<128x128xf32> to vector<128x128xbf16>
    %c0_3 = arith.constant 0 : index
    %c0_4 = arith.constant 0 : index
    %4 = vector.load %arg3[%c0_3, %c0_4] : memref<128x128xbf16, #tpu.memory_space<vmem>>, vector<128x128xbf16>
    %cst_5 = arith.constant dense<0.000000e+00> : vector<128x128xf32>
    %5 = tpu.matmul %3, %4, %cst_5 {dimension_numbers = #tpu.dot_dimension_numbers<[1], [0], [0], [1], [0, 0, 1, 1], [], []>} : vector<128x128xbf16>, vector<128x128xbf16>, vector<128x128xf32> -> vector<128x128xf32>
    %c0_6 = arith.constant 0 : index
    %c0_7 = arith.constant 0 : index
    %6 = vector.load %arg4[%c0_6, %c0_7] : memref<1x128xf32, #tpu.memory_space<vmem>>, vector<1x128xf32>
    %7 = vector.broadcast %6 : vector<1x128xf32> to vector<128x128xf32>
    %8 = arith.addf %5, %7 : vector<128x128xf32>
    %cst_8 = arith.constant 0.000000e+00 : f32
    %9 = vector.broadcast %cst_8 : f32 to vector<128x128xf32>
    %10 = arith.maximumf %8, %9 : vector<128x128xf32>
    %11 = arith.truncf %10 : vector<128x128xf32> to vector<128x128xbf16>
    %cst_9 = arith.constant dense<0.000000e+00> : vector<128x128xf32>
    %12 = tpu.matmul %0, %11, %cst_9 {dimension_numbers = #tpu.dot_dimension_numbers<[1], [0], [0], [1], [0, 0, 1, 1], [], []>} : vector<128x128xbf16>, vector<128x128xbf16>, vector<128x128xf32> -> vector<128x128xf32>
    %13 = arith.truncf %12 : vector<128x128xf32> to vector<128x128xbf16>
    %c0_10 = arith.constant 0 : index
    %c0_11 = arith.constant 0 : index
    %14 = vector.load %arg5[%c0_10, %c0_11] : memref<128x128xbf16, #tpu.memory_space<vmem>>, vector<128x128xbf16>
    %cst_12 = arith.constant dense<0.000000e+00> : vector<128x128xf32>
    %15 = tpu.matmul %13, %14, %cst_12 {dimension_numbers = #tpu.dot_dimension_numbers<[1], [0], [0], [1], [0, 0, 1, 1], [], []>} : vector<128x128xbf16>, vector<128x128xbf16>, vector<128x128xf32> -> vector<128x128xf32>
    %c0_13 = arith.constant 0 : index
    %c0_14 = arith.constant 0 : index
    %16 = vector.load %arg6[%c0_13, %c0_14] : memref<1x128xf32, #tpu.memory_space<vmem>>, vector<1x128xf32>
    %17 = vector.broadcast %16 : vector<1x128xf32> to vector<128x128xf32>
    %18 = arith.addf %15, %17 : vector<128x128xf32>
    %cst_15 = arith.constant 0.000000e+00 : f32
    %19 = vector.broadcast %cst_15 : f32 to vector<128x128xf32>
    %20 = arith.maximumf %18, %19 : vector<128x128xf32>
    %21 = arith.truncf %20 : vector<128x128xf32> to vector<128x128xbf16>
    %cst_16 = arith.constant dense<0.000000e+00> : vector<128x128xf32>
    %22 = tpu.matmul %0, %21, %cst_16 {dimension_numbers = #tpu.dot_dimension_numbers<[1], [0], [0], [1], [0, 0, 1, 1], [], []>} : vector<128x128xbf16>, vector<128x128xbf16>, vector<128x128xf32> -> vector<128x128xf32>
    %23 = arith.truncf %22 : vector<128x128xf32> to vector<128x128xbf16>
    %c0_17 = arith.constant 0 : index
    %c0_18 = arith.constant 0 : index
    %24 = vector.load %arg7[%c0_17, %c0_18] : memref<128x128xbf16, #tpu.memory_space<vmem>>, vector<128x128xbf16>
    %cst_19 = arith.constant dense<0.000000e+00> : vector<128x128xf32>
    %25 = tpu.matmul %23, %24, %cst_19 {dimension_numbers = #tpu.dot_dimension_numbers<[1], [0], [0], [1], [0, 0, 1, 1], [], []>} : vector<128x128xbf16>, vector<128x128xbf16>, vector<128x128xf32> -> vector<128x128xf32>
    %c0_20 = arith.constant 0 : index
    %c0_21 = arith.constant 0 : index
    %26 = vector.load %arg8[%c0_20, %c0_21] : memref<1x128xf32, #tpu.memory_space<vmem>>, vector<1x128xf32>
    %27 = vector.broadcast %26 : vector<1x128xf32> to vector<128x128xf32>
    %28 = arith.addf %25, %27 : vector<128x128xf32>
    %29 = arith.truncf %28 : vector<128x128xf32> to vector<128x128xbf16>
    %c0_22 = arith.constant 0 : index
    %c0_23 = arith.constant 0 : index
    %30 = vector.load %arg2[%c0_22, %c0_23] : memref<8x128xbf16, #tpu.memory_space<vmem>>, vector<8x128xbf16>
    %cst_24 = arith.constant dense<0.000000e+00> : vector<8x128xf32>
    %31 = tpu.matmul %30, %29, %cst_24 {dimension_numbers = #tpu.dot_dimension_numbers<[1], [0], [0], [1], [0, 0, 1, 1], [], []>} : vector<8x128xbf16>, vector<128x128xbf16>, vector<8x128xf32> -> vector<8x128xf32>
    %32 = arith.truncf %31 : vector<8x128xf32> to vector<8x128xbf16>
    %c0_25 = arith.constant 0 : index
    %c0_26 = arith.constant 0 : index
    %33 = vector.load %arg9[%c0_25, %c0_26] : memref<128x128xbf16, #tpu.memory_space<vmem>>, vector<128x128xbf16>
    %cst_27 = arith.constant dense<0.000000e+00> : vector<8x128xf32>
    %34 = tpu.matmul %32, %33, %cst_27 {dimension_numbers = #tpu.dot_dimension_numbers<[1], [0], [0], [1], [0, 0, 1, 1], [], []>} : vector<8x128xbf16>, vector<128x128xbf16>, vector<8x128xf32> -> vector<8x128xf32>
    %c0_28 = arith.constant 0 : index
    %c0_29 = arith.constant 0 : index
    %35 = vector.load %arg10[%c0_28, %c0_29] : memref<1x128xf32, #tpu.memory_space<vmem>>, vector<1x128xf32>
    %36 = vector.broadcast %35 : vector<1x128xf32> to vector<8x128xf32>
    %37 = arith.addf %34, %36 : vector<8x128xf32>
    %c0_30 = arith.constant 0 : index
    %c0_31 = arith.constant 0 : index
    %38 = vector.load %arg11[%c0_30, %c0_31] : memref<8x128xf32, #tpu.memory_space<vmem>>, vector<8x128xf32>
    tpu.vector_store %arg11[%c0_30, %c0_31], %37 {strides = array<i32>} : memref<8x128xf32, #tpu.memory_space<vmem>>, vector<8x128xf32>,
    return
  }
}

</mosaic_0001>

<bundles_post_ra>
// kernel: tpu_custom_call.1
= control target key start
LH: loop header
LB: loop body
LE: loop exit
PB: predicated region body
PF: predicated region fallthrough
CT: control target
= control target key end

     0   :  { %16 = vsyncpa [#allocation3], 0  ;;  %s2185_s0 = inlined_call_operand.hbm [shape: bf16[128,128], index: 0, kind: input, shape index: {}]   ;;  %s2186_s1 = inlined_call_operand.hbm [shape: bf16[128,128], index: 1, kind: input, shape index: {}]   ;;  %s2187_s2 = inlined_call_operand.vmem [shape: bf16[8,128], index: 2, kind: input, shape index: {}]   ;;  %s2188_s3 = inlined_call_operand.hbm [shape: bf16[128,128], index: 3, kind: input, shape index: {}]   ;;  %s2189_s4 = inlined_call_operand.vmem [shape: f32[1,128], index: 4, kind: input, shape index: {}]   ;;  %s2190_s5 = inlined_call_operand.hbm [shape: bf16[128,128], index: 5, kind: input, shape index: {}]   ;;  %s2191_s6 = inlined_call_operand.vmem [shape: f32[1,128], index: 6, kind: input, shape index: {}]   ;;  %s2192_s7 = inlined_call_operand.hbm [shape: bf16[128,128], index: 7, kind: input, shape index: {}]   ;;  %s2193_s8 = inlined_call_operand.vmem [shape: f32[1,128], index: 8, kind: input, shape index: {}]   ;;  %s2194_s9 = inlined_call_operand.hbm [shape: bf16[128,128], index: 9, kind: input, shape index: {}]   ;;  %s2195_s10 = inlined_call_operand.vmem [shape: f32[1,128], index: 10, kind: input, shape index: {}]   ;;  %s2196_s11 = inlined_call_operand.hbm [shape: f32[8,128], index: 11, kind: output, shape index: {}]  }
   0x1   :  { %17 = vsyncpa [#allocation6], 0 }
   0x2   :  { %18 = vsyncpa [#allocation9], 0 }
   0x3   :  { %19 = vsyncpa [#allocation12], 0 }
   0x4   :  { %20 = vsyncpa [#allocation4], 0  ;;  %s1918_s17 = smov [#allocation5]   ;;  %s1919_s19 = smov [#allocation8]  }
   0x5   :  { %s38_s18 = sshll.u32 %s1918_s17, 4  ;;  %s66_s20 = sshll.u32 %s1919_s19, 4  ;;  %s39_s18 = int_to_ptr.vmem [resolvable:$true] %s38_s18  ;;  %s1989_s20 = int_to_ptr.vmem [resolvable:$true] %s66_s20 }
   0x6   :  { %s1754_s23 = scalar_lea.hbm %s2186_s1, 1024 }
   0x7   :  { %p1755_p0 = scmp.ne.s32.totalorder %s2186_s1, %s1754_s23  ;;  %p1758_p1 = scmp.lt.u32.totalorder %s1754_s23, %s2186_s1 }
   0x9   :  { %p1760_p2 = pnand %p1758_p1, %p1755_p0 }
   0xb   :  { %1763 = shalt.err (!%p1760_p2)
}
   0xc   :  { %s1764_s28 = scalar_lea.vmem %s39_s18, 1024  ;;  %p1769_p4 = scmp.lt.s32.totalorder %s39_s18, %s39_s18 }
   0xd   :  { %p1765_p3 = scmp.ne.s32.totalorder %s39_s18, %s1764_s28  ;;  %p1770_p5 = scmp.lt.s32.totalorder %s1764_s28, %s1764_s28 }
   0xf   :  { %p1771_p6 = por %p1770_p5, %p1769_p4 }
  0x11   :  { %p1772_p7 = pnand %p1771_p6, %p1765_p3 }
  0x13   :  { %1775 = shalt.err (!%p1772_p7)
}
  0x14   :  { %s1920_s29 = smov 64   ;;  %s1921_s30 = smov 4  }
  0x15   :  { %44 = dma.hbm_to_vmem [thread:$0]  %s2186_s1, 1024, %s39_s18, [#allocation6], %s1920_s29, %s1920_s29, %s1921_s30  }
  0x16   :  { %s1776_s16 = scalar_lea.hbm %s2190_s5, 1024 }
  0x17   :  { %p1777_p8 = scmp.ne.s32.totalorder %s2190_s5, %s1776_s16  ;;  %p1780_p9 = scmp.lt.u32.totalorder %s1776_s16, %s2190_s5 }
  0x19   :  { %p1782_p10 = pnand %p1780_p9, %p1777_p8 }
  0x1b   :  { %1785 = shalt.err (!%p1782_p10)
}
  0x1c   :  { %s1786_s23 = scalar_lea.vmem %s1989_s20, 1024  ;;  %p1791_p12 = scmp.lt.s32.totalorder %s1989_s20, %s1989_s20 }
  0x1d   :  { %p1787_p11 = scmp.ne.s32.totalorder %s1989_s20, %s1786_s23  ;;  %p1792_p13 = scmp.lt.s32.totalorder %s1786_s23, %s1786_s23 }
  0x1f   :  { %p1793_p0 = por %p1792_p13, %p1791_p12 }
  0x21   :  { %p1794_p1 = pnand %p1793_p0, %p1787_p11 }
  0x23   :  { %1797 = shalt.err (!%p1794_p1)
}
  0x24   :  { %72 = dma.hbm_to_vmem [thread:$0]  %s2190_s5, 1024, %s1989_s20, [#allocation9], %s1920_s29, %s1920_s29, %s1921_s30  }
  0x25   :  { %s1922_s24 = smov [#allocation2]   ;;  %s1923_s26 = smov [#allocation7]  }
  0x26   :  { %s26_s25 = sshll.u32 %s1922_s24, 4  ;;  %s52_s27 = sshll.u32 %s1923_s26, 4  ;;  %s27_s25 = int_to_ptr.vmem [resolvable:$true] %s26_s25  ;;  %s2026_s27 = int_to_ptr.vmem [resolvable:$true] %s52_s27 }
  0x27   :  { %s1798_s13 = scalar_lea.hbm %s2185_s0, 1024 }
  0x28   :  { %p1799_p2 = scmp.ne.s32.totalorder %s2185_s0, %s1798_s13  ;;  %p1802_p3 = scmp.lt.u32.totalorder %s1798_s13, %s2185_s0 }
  0x2a   :  { %p1804_p4 = pnand %p1802_p3, %p1799_p2 }
  0x2c   :  { %1807 = shalt.err (!%p1804_p4)
}
  0x2d   :  { %s1808_s5 = scalar_lea.vmem %s27_s25, 1024  ;;  %p1813_p6 = scmp.lt.s32.totalorder %s27_s25, %s27_s25 }
  0x2e   :  { %p1809_p5 = scmp.ne.s32.totalorder %s27_s25, %s1808_s5  ;;  %p1814_p7 = scmp.lt.s32.totalorder %s1808_s5, %s1808_s5 }
  0x30   :  { %p1815_p8 = por %p1814_p7, %p1813_p6 }
  0x32   :  { %p1816_p9 = pnand %p1815_p8, %p1809_p5 }
  0x34   :  { %1819 = shalt.err (!%p1816_p9)
}
  0x35   :  { %32 = dma.hbm_to_vmem [thread:$0]  %s2185_s0, 1024, %s27_s25, [#allocation3], %s1920_s29, %s1920_s29, %s1921_s30  }
  0x36   :  { %s1820_s23 = scalar_lea.hbm %s2188_s3, 1024 }
  0x37   :  { %p1821_p10 = scmp.ne.s32.totalorder %s2188_s3, %s1820_s23  ;;  %p1824_p11 = scmp.lt.u32.totalorder %s1820_s23, %s2188_s3 }
  0x39   :  { %p1826_p12 = pnand %p1824_p11, %p1821_p10 }
  0x3b   :  { %1829 = shalt.err (!%p1826_p12)
}
  0x3c   :  { %s1830_s28 = scalar_lea.vmem %s2026_s27, 1024  ;;  %p1835_p0 = scmp.lt.s32.totalorder %s2026_s27, %s2026_s27 }
  0x3d   :  { %p1831_p13 = scmp.ne.s32.totalorder %s2026_s27, %s1830_s28  ;;  %p1836_p1 = scmp.lt.s32.totalorder %s1830_s28, %s1830_s28 }
  0x3f   :  { %p1837_p2 = por %p1836_p1, %p1835_p0 }
  0x41   :  { %p1838_p3 = pnand %p1837_p2, %p1831_p13 }
  0x43   :  { %1841 = shalt.err (!%p1838_p3)
}
  0x44   :  { %58 = dma.hbm_to_vmem [thread:$0]  %s2188_s3, 1024, %s2026_s27, [#allocation6], %s1920_s29, %s1920_s29, %s1921_s30  }
  0x45   :  { %s1924_s12 = smov [#allocation10]   ;;  %s1925_s14 = smov [#allocation11]  }
  0x46   :  { %s80_s13 = sshll.u32 %s1924_s12, 4  ;;  %s94_s15 = sshll.u32 %s1925_s14, 4  ;;  %s81_s13 = int_to_ptr.vmem [resolvable:$true] %s80_s13  ;;  %s2063_s15 = int_to_ptr.vmem [resolvable:$true] %s94_s15 }
  0x47   :  { %s1842_s5 = scalar_lea.hbm %s2192_s7, 1024 }
  0x48   :  { %p1843_p4 = scmp.ne.s32.totalorder %s2192_s7, %s1842_s5  ;;  %p1846_p5 = scmp.lt.u32.totalorder %s1842_s5, %s2192_s7 }
  0x4a   :  { %p1848_p6 = pnand %p1846_p5, %p1843_p4 }
  0x4c   :  { %1851 = shalt.err (!%p1848_p6)
}
  0x4d   :  { %s1852_s3 = scalar_lea.vmem %s81_s13, 1024  ;;  %p1857_p8 = scmp.lt.s32.totalorder %s81_s13, %s81_s13 }
  0x4e   :  { %p1853_p7 = scmp.ne.s32.totalorder %s81_s13, %s1852_s3  ;;  %p1858_p9 = scmp.lt.s32.totalorder %s1852_s3, %s1852_s3 }
  0x50   :  { %p1859_p10 = por %p1858_p9, %p1857_p8 }
  0x52   :  { %p1860_p11 = pnand %p1859_p10, %p1853_p7 }
  0x54   :  { %1863 = shalt.err (!%p1860_p11)
}
  0x55   :  { %86 = dma.hbm_to_vmem [thread:$0]  %s2192_s7, 1024, %s81_s13, [#allocation9], %s1920_s29, %s1920_s29, %s1921_s30  }
  0x56   :  { %s1864_s24 = scalar_lea.hbm %s2194_s9, 1024 }
  0x57   :  { %p1865_p12 = scmp.ne.s32.totalorder %s2194_s9, %s1864_s24  ;;  %p1868_p13 = scmp.lt.u32.totalorder %s1864_s24, %s2194_s9 }
  0x59   :  { %p1870_p0 = pnand %p1868_p13, %p1865_p12 }
  0x5b   :  { %1873 = shalt.err (!%p1870_p0)
}
  0x5c   :  { %s1874_s12 = scalar_lea.vmem %s2063_s15, 1024  ;;  %p1879_p2 = scmp.lt.s32.totalorder %s2063_s15, %s2063_s15 }
  0x5d   :  { %p1875_p1 = scmp.ne.s32.totalorder %s2063_s15, %s1874_s12  ;;  %p1880_p3 = scmp.lt.s32.totalorder %s1874_s12, %s1874_s12 }
  0x5f   :  { %p1881_p4 = por %p1880_p3, %p1879_p2 }
  0x61   :  { %p1882_p5 = pnand %p1881_p4, %p1875_p1 }
  0x63   :  { %1885 = shalt.err (!%p1882_p5)
}
  0x64   :  { %100 = dma.hbm_to_vmem [thread:$0]  %s2194_s9, 1024, %s2063_s15, [#allocation12], %s1920_s29, %s1920_s29, %s1921_s30  }
  0x65   :  { %1908 = dma.done.wait [#allocation3], 1024  }
  0x66   :  { %1909 = vsyncadd [#allocation3], 4294966272 }
  0x67   :  { %1910 = dma.done.wait [#allocation6], 2048  }
  0x68   :  { %1911 = vsyncadd [#allocation6], 4294965248 }
  0x69   :  { %1912 = dma.done.wait [#allocation9], 2048  }
  0x6a   :  { %1913 = vsyncadd [#allocation9], 4294965248 }
  0x6b   :  { %1914 = dma.done.wait [#allocation12], 1024  }
  0x6c   :  { %1915 = vsyncadd [#allocation12], 4294966272  ;;  %v1706_v0 = vld [vmem:[#allocation5] sm:$0xff]   ;;  %v1707_v1 = vld [vmem:[#allocation5 + $0x8] sm:$0xff]   ;;  %vm1927_vm0 = vmmov 0   ;;  %s1928_s5 = smov [#allocation13]  }
  0x6d   :  { %1463 = vmatprep.subr.bf16.mxu0 %v1706_v0  ;;  %v1708_v2 = vld [vmem:[#allocation5 + $0x10] sm:$0xff]   ;;  %v1709_v3 = vld [vmem:[#allocation5 + $0x18] sm:$0xff]   ;;  %v2100_v4 = vld [vmem:[#allocation2] sm:$0xff]   ;;  %s1285_s20 = sshll.u32 %s1928_s5, 4  ;;  %s1286_s20 = int_to_ptr.vmem [resolvable:$true] %s1285_s20 }
  0x6e   :  { %1464 = vmatpush3.bf16.msra.mxu0 %v1706_v0  ;;  %1479 = vmatprep.mubr.bf16.mxu0 %v2100_v4  ;;  %v1710_v5 = vld [vmem:[#allocation5 + $0x20] sm:$0xff]   ;;  %v1711_v6 = vld [vmem:[#allocation5 + $0x28] sm:$0xff]   ;;  %v1712_v9 = vld [vmem:[#allocation5 + $0x30] sm:$0xff]   ;;  %p1891_p7 = scmp.lt.s32.totalorder %s1286_s20, %s1286_s20 }
  0x6f   :  { %1465 = vmatprep.subr.bf16.mxu0 %v1707_v1  ;;  %v1722_v7 = vld [vmem:[#allocation7] sm:$0xff]   ;;  %v1723_v8 = vld [vmem:[#allocation7 + $0x8] sm:$0xff]   ;;  %v1724_v10 = vld [vmem:[#allocation7 + $0x10] sm:$0xff]  }
  0x70   :  { %1495 = vmatprep.subr.bf16.mxu1 %v1722_v7  ;;  %v1713_v11 = vld [vmem:[#allocation5 + $0x38] sm:$0xff]   ;;  %v1726_v13 = vld [vmem:[#allocation7 + $0x20] sm:$0xff]   ;;  %v2103_v14 = vld [vmem:[#allocation2 + $0x8] sm:$0xff]  }
  0x71   :  { %1496 = vmatpush3.bf16.msra.mxu1 %v1722_v7  ;;  %v1725_v12 = vld [vmem:[#allocation7 + $0x18] sm:$0xff]   ;;  %v2105_v15 = vld [vmem:[#allocation2 + $0x10] sm:$0xff]   ;;  %v1727_v16 = vld [vmem:[#allocation7 + $0x28] sm:$0xff]  }
  0x72   :  { %1466 = vmatpush3.bf16.msra.mxu0 %v1707_v1  ;;  %1497 = vmatprep.subr.bf16.mxu1 %v1723_v8  ;;  %v1728_v17 = vld [vmem:[#allocation7 + $0x30] sm:$0xff]   ;;  %v2109_v18 = vld [vmem:[#allocation2 + $0x18] sm:$0xff]   ;;  %v2111_v19 = vld [vmem:[#allocation2 + $0x20] sm:$0xff]  }
  0x73   :  { %1467 = vmatprep.subr.bf16.mxu0 %v1708_v2  ;;  %v2115_v20 = vld [vmem:[#allocation2 + $0x28] sm:$0xff]   ;;  %v2117_v21 = vld [vmem:[#allocation2 + $0x30] sm:$0xff]   ;;  %v2121_v22 = vld [vmem:[#allocation2 + $0x38] sm:$0xff]  }
  0x74   :  { %v1729_v23 = vld [vmem:[#allocation7 + $0x38] sm:$0xff]   ;;  %v1730_v48 = vld [vmem:[#allocation8] sm:$0xff]   ;;  %v1731_v49 = vld [vmem:[#allocation8 + $0x8] sm:$0xff]  }
  0x75   :  { %1498 = vmatpush3.bf16.msra.mxu1 %v1723_v8  ;;  %v1732_v50 = vld [vmem:[#allocation8 + $0x10] sm:$0xff]   ;;  %v1733_v51 = vld [vmem:[#allocation8 + $0x18] sm:$0xff]   ;;  %v1734_v52 = vld [vmem:[#allocation8 + $0x20] sm:$0xff]  }
  0x76   :  { %1468 = vmatpush3.bf16.msra.mxu0 %v1708_v2  ;;  %1499 = vmatprep.subr.bf16.mxu1 %v1724_v10  ;;  %v1735_v53 = vld [vmem:[#allocation8 + $0x28] sm:$0xff]   ;;  %v1736_v54 = vld [vmem:[#allocation8 + $0x30] sm:$0xff]   ;;  %v1313_v55 = vld [vmem:[%s2189_s4] ss:$0 sm:$0xff] }
  0x77   :  { %1469 = vmatprep.subr.bf16.mxu0 %v1709_v3 }
  0x79   :  { %1500 = vmatpush3.bf16.msra.mxu1 %v1724_v10 }
  0x7a   :  { %1470 = vmatpush3.bf16.msra.mxu0 %v1709_v3  ;;  %1501 = vmatprep.subr.bf16.mxu1 %v1725_v12 }
  0x7b   :  { %1471 = vmatprep.subr.bf16.mxu0 %v1710_v5 }
  0x7d   :  { %1502 = vmatpush3.bf16.msra.mxu1 %v1725_v12 }
  0x7e   :  { %1472 = vmatpush3.bf16.msra.mxu0 %v1710_v5  ;;  %1503 = vmatprep.subr.bf16.mxu1 %v1726_v13 }
  0x7f   :  { %1473 = vmatprep.subr.bf16.mxu0 %v1711_v6 }
  0x81   :  { %1504 = vmatpush3.bf16.msra.mxu1 %v1726_v13 }
  0x82   :  { %1474 = vmatpush3.bf16.msra.mxu0 %v1711_v6  ;;  %1505 = vmatprep.subr.bf16.mxu1 %v1727_v16 }
  0x83   :  { %1475 = vmatprep.subr.bf16.mxu0 %v1712_v9 }
  0x85   :  { %1506 = vmatpush3.bf16.msra.mxu1 %v1727_v16 }
  0x86   :  { %1476 = vmatpush3.bf16.msra.mxu0 %v1712_v9  ;;  %1507 = vmatprep.subr.bf16.mxu1 %v1728_v17 }
  0x87   :  { %1477 = vmatprep.subr.bf16.mxu0 %v1713_v11 }
  0x89   :  { %1508 = vmatpush3.bf16.msra.mxu1 %v1728_v17 }
  0x8a   :  { %1478 = vmatpush3.bf16.msra.mxu0 %v1713_v11  ;;  %1509 = vmatprep.subr.bf16.mxu1 %v1729_v23 }
  0x8d   :  { %1480 = vmatmul.mubr.bf16.vlgmr.msra.gmra.mrb[0].mxu0 %v2103_v14  ;;  %1510 = vmatpush3.bf16.msra.mxu1 %v1729_v23 }
  0x8e   :  { %1483 = vmatprep.mubr.bf16.mxu0 %v2105_v15  ;;  %1559 = vmatprep.subr.bf16.mxu1 %v1730_v48 }
  0x95   :  { %1484 = vmatmul.mubr.bf16.gmra.mrb[4].mxu0 %v2109_v18 }
  0x96   :  { %1487 = vmatprep.mubr.bf16.mxu0 %v2111_v19 }
  0x9d   :  { %1488 = vmatmul.mubr.bf16.gmra.mrb[8].mxu0 %v2115_v20 }
  0x9e   :  { %1491 = vmatprep.mubr.bf16.mxu0 %v2117_v21 }
  0xa5   :  { %1492 = vmatmul.mubr.bf16.gmra.mrb[12].mxu0 %v2121_v22 }
  0xa6   :  { %1543 = vmatprep.mubr.bf16.mxu0 %v2100_v4 }
 0x160   :  { %v1481_v24 = vpop.f32.mrb[0].mxu0 }
 0x161   :  { %v284_v25 = vpop.f32.mrb[1].mxu0 }
 0x162   :  { %v1482_v26 = vpop.f32.mrb[2].mxu0 }
 0x163   :  { %v348_v27 = vpack.c.bf16 %v1482_v26, %v1481_v24  ;;  %v287_v28 = vpop.f32.mrb[3].mxu0 }
 0x164   :  { %v347_v29 = vpack.c.bf16 %v287_v28, %v284_v25 }
 0x166   :  { %1511 = vmatprep.mubr.bf16.mxu1 %v347_v29 }
 0x167   :  { %1512 = vmatmul.mubr.bf16.vlgmr.msra.gmra.mrb[0].mxu1 %v348_v27 }
 0x168   :  { %v1485_v30 = vpop.f32.mrb[4].mxu0  ;;  %1560 = vmatpush3.bf16.msra.mxu1 %v1730_v48 }
 0x169   :  { %v300_v31 = vpop.f32.mrb[5].mxu0  ;;  %1561 = vmatprep.subr.bf16.mxu1 %v1731_v49 }
 0x16a   :  { %v1486_v32 = vpop.f32.mrb[6].mxu0 }
 0x16b   :  { %v350_v33 = vpack.c.bf16 %v1486_v32, %v1485_v30  ;;  %v303_v34 = vpop.f32.mrb[7].mxu0 }
 0x16c   :  { %v349_v35 = vpack.c.bf16 %v303_v34, %v300_v31  ;;  %1562 = vmatpush3.bf16.msra.mxu1 %v1731_v49 }
 0x16d   :  { %1563 = vmatprep.subr.bf16.mxu1 %v1732_v50 }
 0x16e   :  { %1515 = vmatprep.mubr.bf16.mxu1 %v349_v35 }
 0x16f   :  { %1516 = vmatmul.mubr.bf16.gmra.mrb[4].mxu1 %v350_v33 }
 0x170   :  { %v1489_v36 = vpop.f32.mrb[8].mxu0  ;;  %1564 = vmatpush3.bf16.msra.mxu1 %v1732_v50 }
 0x171   :  { %v316_v37 = vpop.f32.mrb[9].mxu0  ;;  %1565 = vmatprep.subr.bf16.mxu1 %v1733_v51 }
 0x172   :  { %v1490_v38 = vpop.f32.mrb[10].mxu0 }
 0x173   :  { %v352_v39 = vpack.c.bf16 %v1490_v38, %v1489_v36  ;;  %v319_v40 = vpop.f32.mrb[11].mxu0 }
 0x174   :  { %v351_v41 = vpack.c.bf16 %v319_v40, %v316_v37  ;;  %1566 = vmatpush3.bf16.msra.mxu1 %v1733_v51 }
 0x175   :  { %1567 = vmatprep.subr.bf16.mxu1 %v1734_v52 }
 0x176   :  { %1519 = vmatprep.mubr.bf16.mxu1 %v351_v41 }
 0x177   :  { %1520 = vmatmul.mubr.bf16.gmra.mrb[8].mxu1 %v352_v39 }
 0x178   :  { %v1493_v42 = vpop.f32.mrb[12].mxu0  ;;  %1568 = vmatpush3.bf16.msra.mxu1 %v1734_v52 }
 0x179   :  { %v332_v43 = vpop.f32.mrb[13].mxu0  ;;  %1569 = vmatprep.subr.bf16.mxu1 %v1735_v53 }
 0x17a   :  { %v1494_v44 = vpop.f32.mrb[14].mxu0 }
 0x17b   :  { %v354_v45 = vpack.c.bf16 %v1494_v44, %v1493_v42  ;;  %v335_v46 = vpop.f32.mrb[15].mxu0 }
 0x17c   :  { %v353_v47 = vpack.c.bf16 %v335_v46, %v332_v43  ;;  %1570 = vmatpush3.bf16.msra.mxu1 %v1735_v53 }
 0x17d   :  { %1571 = vmatprep.subr.bf16.mxu1 %v1736_v54 }
 0x17e   :  { %1523 = vmatprep.mubr.bf16.mxu1 %v353_v47 }
 0x17f   :  { %1524 = vmatmul.mubr.bf16.gmra.mrb[12].mxu1 %v354_v45 }
 0x180   :  { %1572 = vmatpush3.bf16.msra.mxu1 %v1736_v54 }
 0x23a   :  { %v1513_v56 = vpop.f32.mrb[0].mxu1 }
 0x23b   :  { %v469_v57 = vadd.f32 %v1513_v56, %v1313_v55  ;;  %v460_v58 = vpop.f32.mrb[1].mxu1 }
 0x23c   :  { %v461_v59 = vadd.f32 %v1313_v55, %v460_v58  ;;  %v1514_v60 = vpop.f32.mrb[2].mxu1 }
 0x23d   :  { %v472_v61 = vadd.f32 %v1514_v60, %v1313_v55  ;;  %v463_v62 = vpop.f32.mrb[3].mxu1  ;;  %v525_v0 = vmax.f32 %v469_v57, 0.0 }
 0x23e   :  { %v464_v63 = vadd.f32 %v1313_v55, %v463_v62  ;;  %v523_v2 = vmax.f32 %v461_v59, 0.0 }
 0x23f   :  { %v526_v1 = vmax.f32 %v472_v61, 0.0 }
 0x240   :  { %v524_v3 = vmax.f32 %v464_v63, 0.0 }
 0x241   :  { %v540_v5 = vpack.c.bf16 %v526_v1, %v525_v0 }
 0x242   :  { %v539_v6 = vpack.c.bf16 %v524_v3, %v523_v2  ;;  %v1517_v7 = vpop.f32.mrb[4].mxu1 }
 0x243   :  { %v485_v8 = vadd.f32 %v1517_v7, %v1313_v55  ;;  %v476_v9 = vpop.f32.mrb[5].mxu1 }
 0x244   :  { %v477_v10 = vadd.f32 %v1313_v55, %v476_v9  ;;  %v1518_v11 = vpop.f32.mrb[6].mxu1  ;;  %1527 = vmatprep.subr.bf16.mxu0 %v539_v6 }
 0x245   :  { %v488_v12 = vadd.f32 %v1518_v11, %v1313_v55  ;;  %v479_v13 = vpop.f32.mrb[7].mxu1  ;;  %1528 = vmatpush3.bf16.msra.mxu0 %v539_v6  ;;  %v529_v17 = vmax.f32 %v485_v8, 0.0 }
 0x246   :  { %v480_v16 = vadd.f32 %v1313_v55, %v479_v13  ;;  %1529 = vmatprep.subr.bf16.mxu0 %v540_v5  ;;  %v527_v24 = vmax.f32 %v477_v10, 0.0 }
 0x247   :  { %v530_v23 = vmax.f32 %v488_v12, 0.0 }
 0x248   :  { %v528_v25 = vmax.f32 %v480_v16, 0.0 }
 0x249   :  { %v542_v26 = vpack.c.bf16 %v530_v23, %v529_v17  ;;  %1530 = vmatpush3.bf16.msra.mxu0 %v540_v5 }
 0x24a   :  { %v541_v27 = vpack.c.bf16 %v528_v25, %v527_v24  ;;  %v1521_v28 = vpop.f32.mrb[8].mxu1  ;;  %v1738_v24 = vld [vmem:[#allocation10] sm:$0xff]   ;;  %v1739_v25 = vld [vmem:[#allocation10 + $0x8] sm:$0xff]  }
 0x24b   :  { %v501_v29 = vadd.f32 %v1521_v28, %v1313_v55  ;;  %v492_v30 = vpop.f32.mrb[9].mxu1  ;;  %v1742_v28 = vld [vmem:[#allocation10 + $0x20] sm:$0xff]  }
 0x24c   :  { %v493_v31 = vadd.f32 %v1313_v55, %v492_v30  ;;  %v1522_v32 = vpop.f32.mrb[10].mxu1  ;;  %1531 = vmatprep.subr.bf16.mxu0 %v541_v27  ;;  %v1744_v30 = vld [vmem:[#allocation10 + $0x30] sm:$0xff]  }
 0x24d   :  { %v504_v33 = vadd.f32 %v1522_v32, %v1313_v55  ;;  %v495_v34 = vpop.f32.mrb[11].mxu1  ;;  %1532 = vmatpush3.bf16.msra.mxu0 %v541_v27  ;;  %v533_v36 = vmax.f32 %v501_v29, 0.0  ;;  %v1741_v27 = vld [vmem:[#allocation10 + $0x18] sm:$0xff]   ;;  %v1743_v29 = vld [vmem:[#allocation10 + $0x28] sm:$0xff]  }
 0x24e   :  { %v496_v35 = vadd.f32 %v1313_v55, %v495_v34  ;;  %1533 = vmatprep.subr.bf16.mxu0 %v542_v26  ;;  %v531_v38 = vmax.f32 %v493_v31, 0.0  ;;  %v1322_v31 = vld [vmem:[%s2191_s6] ss:$0 sm:$0xff] }
 0x24f   :  { %v534_v37 = vmax.f32 %v504_v33, 0.0 }
 0x250   :  { %v532_v39 = vmax.f32 %v496_v35, 0.0 }
 0x251   :  { %v544_v40 = vpack.c.bf16 %v534_v37, %v533_v36  ;;  %1534 = vmatpush3.bf16.msra.mxu0 %v542_v26  ;;  %v1740_v26 = vld [vmem:[#allocation10 + $0x10] sm:$0xff]  }
 0x252   :  { %v543_v41 = vpack.c.bf16 %v532_v39, %v531_v38  ;;  %v1525_v42 = vpop.f32.mrb[12].mxu1 }
 0x253   :  { %v517_v43 = vadd.f32 %v1525_v42, %v1313_v55  ;;  %v508_v44 = vpop.f32.mrb[13].mxu1 }
 0x254   :  { %v509_v45 = vadd.f32 %v1313_v55, %v508_v44  ;;  %v1526_v46 = vpop.f32.mrb[14].mxu1  ;;  %1535 = vmatprep.subr.bf16.mxu0 %v543_v41 }
 0x255   :  { %v520_v47 = vadd.f32 %v1526_v46, %v1313_v55  ;;  %v511_v48 = vpop.f32.mrb[15].mxu1  ;;  %1536 = vmatpush3.bf16.msra.mxu0 %v543_v41  ;;  %v537_v50 = vmax.f32 %v517_v43, 0.0 }
 0x256   :  { %v512_v49 = vadd.f32 %v1313_v55, %v511_v48  ;;  %1537 = vmatprep.subr.bf16.mxu0 %v544_v40  ;;  %v535_v52 = vmax.f32 %v509_v45, 0.0  ;;  %v1737_v55 = vld [vmem:[#allocation8 + $0x38] sm:$0xff]  }
 0x257   :  { %v538_v51 = vmax.f32 %v520_v47, 0.0  ;;  %1573 = vmatprep.subr.bf16.mxu1 %v1737_v55 }
 0x258   :  { %v536_v53 = vmax.f32 %v512_v49, 0.0  ;;  %1574 = vmatpush3.bf16.msra.mxu1 %v1737_v55 }
 0x259   :  { %v546_v54 = vpack.c.bf16 %v538_v51, %v537_v50  ;;  %1538 = vmatpush3.bf16.msra.mxu0 %v544_v40  ;;  %1623 = vmatprep.subr.bf16.mxu1 %v1738_v24 }
 0x25a   :  { %v545_v56 = vpack.c.bf16 %v536_v53, %v535_v52 }
 0x25c   :  { %1539 = vmatprep.subr.bf16.mxu0 %v545_v56 }
 0x25d   :  { %1540 = vmatpush3.bf16.msra.mxu0 %v545_v56 }
 0x25e   :  { %1541 = vmatprep.subr.bf16.mxu0 %v546_v54 }
 0x261   :  { %1542 = vmatpush3.bf16.msra.mxu0 %v546_v54 }
 0x264   :  { %1544 = vmatmul.mubr.bf16.vlgmr.msra.gmra.mrb[16].mxu0 %v2103_v14 }
 0x265   :  { %1547 = vmatprep.mubr.bf16.mxu0 %v2105_v15 }
 0x26c   :  { %1548 = vmatmul.mubr.bf16.gmra.mrb[20].mxu0 %v2109_v18 }
 0x26d   :  { %1551 = vmatprep.mubr.bf16.mxu0 %v2111_v19 }
 0x274   :  { %1552 = vmatmul.mubr.bf16.gmra.mrb[24].mxu0 %v2115_v20 }
 0x275   :  { %1555 = vmatprep.mubr.bf16.mxu0 %v2117_v21 }
 0x27c   :  { %1556 = vmatmul.mubr.bf16.gmra.mrb[28].mxu0 %v2121_v22 }
 0x27d   :  { %1607 = vmatprep.mubr.bf16.mxu0 %v2100_v4 }
 0x337   :  { %v1545_v57 = vpop.f32.mrb[16].mxu0 }
 0x338   :  { %v581_v58 = vpop.f32.mrb[17].mxu0 }
 0x339   :  { %v1546_v59 = vpop.f32.mrb[18].mxu0 }
 0x33a   :  { %v645_v60 = vpack.c.bf16 %v1546_v59, %v1545_v57  ;;  %v584_v61 = vpop.f32.mrb[19].mxu0 }
 0x33b   :  { %v644_v62 = vpack.c.bf16 %v584_v61, %v581_v58 }
 0x33d   :  { %1575 = vmatprep.mubr.bf16.mxu1 %v644_v62 }
 0x33e   :  { %1576 = vmatmul.mubr.bf16.vlgmr.msra.gmra.mrb[16].mxu1 %v645_v60 }
 0x33f   :  { %v1549_v63 = vpop.f32.mrb[20].mxu0  ;;  %1624 = vmatpush3.bf16.msra.mxu1 %v1738_v24 }
 0x340   :  { %v597_v0 = vpop.f32.mrb[21].mxu0  ;;  %1625 = vmatprep.subr.bf16.mxu1 %v1739_v25 }
 0x341   :  { %v1550_v1 = vpop.f32.mrb[22].mxu0 }
 0x342   :  { %v647_v2 = vpack.c.bf16 %v1550_v1, %v1549_v63  ;;  %v600_v3 = vpop.f32.mrb[23].mxu0 }
 0x343   :  { %v646_v5 = vpack.c.bf16 %v600_v3, %v597_v0  ;;  %1626 = vmatpush3.bf16.msra.mxu1 %v1739_v25 }
 0x344   :  { %1627 = vmatprep.subr.bf16.mxu1 %v1740_v26 }
 0x345   :  { %1579 = vmatprep.mubr.bf16.mxu1 %v646_v5 }
 0x346   :  { %1580 = vmatmul.mubr.bf16.gmra.mrb[20].mxu1 %v647_v2 }
 0x347   :  { %v1553_v4 = vpop.f32.mrb[24].mxu0  ;;  %1628 = vmatpush3.bf16.msra.mxu1 %v1740_v26 }
 0x348   :  { %v613_v6 = vpop.f32.mrb[25].mxu0  ;;  %1629 = vmatprep.subr.bf16.mxu1 %v1741_v27 }
 0x349   :  { %v1554_v7 = vpop.f32.mrb[26].mxu0 }
 0x34a   :  { %v649_v8 = vpack.c.bf16 %v1554_v7, %v1553_v4  ;;  %v616_v9 = vpop.f32.mrb[27].mxu0 }
 0x34b   :  { %v648_v10 = vpack.c.bf16 %v616_v9, %v613_v6  ;;  %1630 = vmatpush3.bf16.msra.mxu1 %v1741_v27 }
 0x34c   :  { %1631 = vmatprep.subr.bf16.mxu1 %v1742_v28 }
 0x34d   :  { %1583 = vmatprep.mubr.bf16.mxu1 %v648_v10 }
 0x34e   :  { %1584 = vmatmul.mubr.bf16.gmra.mrb[24].mxu1 %v649_v8 }
 0x34f   :  { %v1557_v11 = vpop.f32.mrb[28].mxu0  ;;  %1632 = vmatpush3.bf16.msra.mxu1 %v1742_v28 }
 0x350   :  { %v629_v12 = vpop.f32.mrb[29].mxu0  ;;  %1633 = vmatprep.subr.bf16.mxu1 %v1743_v29 }
 0x351   :  { %v1558_v13 = vpop.f32.mrb[30].mxu0 }
 0x352   :  { %v651_v16 = vpack.c.bf16 %v1558_v13, %v1557_v11  ;;  %v632_v17 = vpop.f32.mrb[31].mxu0 }
 0x353   :  { %v650_v23 = vpack.c.bf16 %v632_v17, %v629_v12  ;;  %1634 = vmatpush3.bf16.msra.mxu1 %v1743_v29 }
 0x354   :  { %1635 = vmatprep.subr.bf16.mxu1 %v1744_v30 }
 0x355   :  { %1587 = vmatprep.mubr.bf16.mxu1 %v650_v23 }
 0x356   :  { %1588 = vmatmul.mubr.bf16.gmra.mrb[28].mxu1 %v651_v16 }
 0x357   :  { %1636 = vmatpush3.bf16.msra.mxu1 %v1744_v30 }
 0x411   :  { %v1577_v32 = vpop.f32.mrb[16].mxu1 }
 0x412   :  { %v766_v33 = vadd.f32 %v1577_v32, %v1322_v31  ;;  %v757_v34 = vpop.f32.mrb[17].mxu1 }
 0x413   :  { %v758_v35 = vadd.f32 %v1322_v31, %v757_v34  ;;  %v1578_v36 = vpop.f32.mrb[18].mxu1 }
 0x414   :  { %v769_v37 = vadd.f32 %v1578_v36, %v1322_v31  ;;  %v760_v38 = vpop.f32.mrb[19].mxu1  ;;  %v822_v40 = vmax.f32 %v766_v33, 0.0 }
 0x415   :  { %v761_v39 = vadd.f32 %v1322_v31, %v760_v38  ;;  %v820_v42 = vmax.f32 %v758_v35, 0.0 }
 0x416   :  { %v823_v41 = vmax.f32 %v769_v37, 0.0 }
 0x417   :  { %v821_v43 = vmax.f32 %v761_v39, 0.0 }
 0x418   :  { %v837_v44 = vpack.c.bf16 %v823_v41, %v822_v40 }
 0x419   :  { %v836_v45 = vpack.c.bf16 %v821_v43, %v820_v42  ;;  %v1581_v46 = vpop.f32.mrb[20].mxu1 }
 0x41a   :  { %v782_v47 = vadd.f32 %v1581_v46, %v1322_v31  ;;  %v773_v48 = vpop.f32.mrb[21].mxu1 }
 0x41b   :  { %v774_v49 = vadd.f32 %v1322_v31, %v773_v48  ;;  %v1582_v50 = vpop.f32.mrb[22].mxu1  ;;  %1591 = vmatprep.subr.bf16.mxu0 %v836_v45 }
 0x41c   :  { %v785_v51 = vadd.f32 %v1582_v50, %v1322_v31  ;;  %v776_v52 = vpop.f32.mrb[23].mxu1  ;;  %1592 = vmatpush3.bf16.msra.mxu0 %v836_v45  ;;  %v826_v54 = vmax.f32 %v782_v47, 0.0  ;;  %v1746_v50 = vld [vmem:[#allocation11] sm:$0xff]  }
 0x41d   :  { %v777_v53 = vadd.f32 %v1322_v31, %v776_v52  ;;  %1593 = vmatprep.subr.bf16.mxu0 %v837_v44  ;;  %v824_v55 = vmax.f32 %v774_v49, 0.0  ;;  %v1926_v49 = vmov 0.0   ;;  %v1748_v52 = vld [vmem:[#allocation11 + $0x10] sm:$0xff]  }
 0x41e   :  { %v827_v56 = vmax.f32 %v785_v51, 0.0  ;;  %v1747_v51 = vld [vmem:[#allocation11 + $0x8] sm:$0xff]  }
 0x41f   :  { %v825_v57 = vmax.f32 %v777_v53, 0.0  ;;  %v1749_v53 = vld [vmem:[#allocation11 + $0x18] sm:$0xff]  }
 0x420   :  { %v839_v58 = vpack.c.bf16 %v827_v56, %v826_v54  ;;  %1594 = vmatpush3.bf16.msra.mxu0 %v837_v44  ;;  %v1750_v54 = vld [vmem:[#allocation11 + $0x20] sm:$0xff]   ;;  %v1751_v56 = vld [vmem:[#allocation11 + $0x28] sm:$0xff]  }
 0x421   :  { %v838_v59 = vpack.c.bf16 %v825_v57, %v824_v55  ;;  %v1585_v60 = vpop.f32.mrb[24].mxu1  ;;  %v1752_v55 = vld [vmem:[#allocation11 + $0x30] sm:$0xff]  }
 0x422   :  { %v798_v61 = vadd.f32 %v1585_v60, %v1322_v31  ;;  %v789_v62 = vpop.f32.mrb[25].mxu1 }
 0x423   :  { %v790_v63 = vadd.f32 %v1322_v31, %v789_v62  ;;  %v1586_v0 = vpop.f32.mrb[26].mxu1  ;;  %1595 = vmatprep.subr.bf16.mxu0 %v838_v59 }
 0x424   :  { %v801_v1 = vadd.f32 %v1586_v0, %v1322_v31  ;;  %v792_v2 = vpop.f32.mrb[27].mxu1  ;;  %1596 = vmatpush3.bf16.msra.mxu0 %v838_v59  ;;  %v830_v5 = vmax.f32 %v798_v61, 0.0 }
 0x425   :  { %v793_v3 = vadd.f32 %v1322_v31, %v792_v2  ;;  %1597 = vmatprep.subr.bf16.mxu0 %v839_v58  ;;  %v828_v6 = vmax.f32 %v790_v63, 0.0 }
 0x426   :  { %v831_v4 = vmax.f32 %v801_v1, 0.0 }
 0x427   :  { %v829_v7 = vmax.f32 %v793_v3, 0.0 }
 0x428   :  { %v841_v8 = vpack.c.bf16 %v831_v4, %v830_v5  ;;  %1598 = vmatpush3.bf16.msra.mxu0 %v839_v58  ;;  %v1331_v58 = vld [vmem:[%s2193_s8] ss:$0 sm:$0xff] }
 0x429   :  { %v840_v9 = vpack.c.bf16 %v829_v7, %v828_v6  ;;  %v1589_v10 = vpop.f32.mrb[28].mxu1 }
 0x42a   :  { %v814_v11 = vadd.f32 %v1589_v10, %v1322_v31  ;;  %v805_v12 = vpop.f32.mrb[29].mxu1 }
 0x42b   :  { %v806_v13 = vadd.f32 %v1322_v31, %v805_v12  ;;  %v1590_v16 = vpop.f32.mrb[30].mxu1  ;;  %1599 = vmatprep.subr.bf16.mxu0 %v840_v9 }
 0x42c   :  { %v817_v17 = vadd.f32 %v1590_v16, %v1322_v31  ;;  %v808_v23 = vpop.f32.mrb[31].mxu1  ;;  %1600 = vmatpush3.bf16.msra.mxu0 %v840_v9  ;;  %v834_v25 = vmax.f32 %v814_v11, 0.0 }
 0x42d   :  { %v809_v24 = vadd.f32 %v1322_v31, %v808_v23  ;;  %1601 = vmatprep.subr.bf16.mxu0 %v841_v8  ;;  %v832_v27 = vmax.f32 %v806_v13, 0.0  ;;  %v1745_v31 = vld [vmem:[#allocation10 + $0x38] sm:$0xff]  }
 0x42e   :  { %v835_v26 = vmax.f32 %v817_v17, 0.0  ;;  %1637 = vmatprep.subr.bf16.mxu1 %v1745_v31 }
 0x42f   :  { %v833_v28 = vmax.f32 %v809_v24, 0.0  ;;  %1638 = vmatpush3.bf16.msra.mxu1 %v1745_v31 }
 0x430   :  { %v843_v29 = vpack.c.bf16 %v835_v26, %v834_v25  ;;  %1602 = vmatpush3.bf16.msra.mxu0 %v841_v8  ;;  %1675 = vmatprep.subr.bf16.mxu1 %v1926_v49 }
 0x431   :  { %v842_v30 = vpack.c.bf16 %v833_v28, %v832_v27 }
 0x433   :  { %1603 = vmatprep.subr.bf16.mxu0 %v842_v30 }
 0x434   :  { %1604 = vmatpush3.bf16.msra.mxu0 %v842_v30 }
 0x435   :  { %1605 = vmatprep.subr.bf16.mxu0 %v843_v29 }
 0x438   :  { %1606 = vmatpush3.bf16.msra.mxu0 %v843_v29 }
 0x439   :  { %1655 = vmatprep.subr.bf16.mxu0 %v1926_v49 }
 0x43b   :  { %1608 = vmatmul.mubr.bf16.vlgmr.msra.gmra.mrb[32].mxu0 %v2103_v14 }
 0x43c   :  { %1611 = vmatprep.mubr.bf16.mxu0 %v2105_v15 }
 0x443   :  { %1612 = vmatmul.mubr.bf16.gmra.mrb[36].mxu0 %v2109_v18 }
 0x444   :  { %1615 = vmatprep.mubr.bf16.mxu0 %v2111_v19 }
 0x44b   :  { %1616 = vmatmul.mubr.bf16.gmra.mrb[40].mxu0 %v2115_v20 }
 0x44c   :  { %1619 = vmatprep.mubr.bf16.mxu0 %v2117_v21 }
 0x453   :  { %1620 = vmatmul.mubr.bf16.gmra.mrb[44].mxu0 %v2121_v22 }
 0x454   :  { %1671 = vmatprep.mubr.msk.bf16.mxu0 %vm1927_vm0, %v1926_v49 }
 0x50e   :  { %v1609_v32 = vpop.f32.mrb[32].mxu0 }
 0x50f   :  { %v878_v33 = vpop.f32.mrb[33].mxu0 }
 0x510   :  { %v1610_v34 = vpop.f32.mrb[34].mxu0 }
 0x511   :  { %v942_v35 = vpack.c.bf16 %v1610_v34, %v1609_v32  ;;  %v881_v14 = vpop.f32.mrb[35].mxu0 }
 0x512   :  { %v941_v36 = vpack.c.bf16 %v881_v14, %v878_v33 }
 0x514   :  { %1639 = vmatprep.mubr.bf16.mxu1 %v941_v36 }
 0x515   :  { %1640 = vmatmul.mubr.bf16.vlgmr.msra.gmra.mrb[32].mxu1 %v942_v35 }
 0x516   :  { %v1613_v15 = vpop.f32.mrb[36].mxu0  ;;  %1676 = vmatpush3.bf16.msra.mxu1 %v1746_v50 }
 0x517   :  { %v894_v18 = vpop.f32.mrb[37].mxu0  ;;  %1677 = vmatprep.subr.bf16.mxu1 %v1926_v49 }
 0x518   :  { %v1614_v19 = vpop.f32.mrb[38].mxu0 }
 0x519   :  { %v944_v37 = vpack.c.bf16 %v1614_v19, %v1613_v15  ;;  %v897_v20 = vpop.f32.mrb[39].mxu0 }
 0x51a   :  { %v943_v38 = vpack.c.bf16 %v897_v20, %v894_v18  ;;  %1678 = vmatpush3.bf16.msra.mxu1 %v1747_v51  ;;  %v1753_v20 = vld [vmem:[#allocation11 + $0x38] sm:$0xff]  }
 0x51b   :  { %1679 = vmatprep.subr.bf16.mxu1 %v1926_v49 }
 0x51c   :  { %1643 = vmatprep.mubr.bf16.mxu1 %v943_v38 }
 0x51d   :  { %1644 = vmatmul.mubr.bf16.gmra.mrb[36].mxu1 %v944_v37  ;;  %v1125_v37 = vld [vmem:[%s2187_s2] sm:$0xf]  ;;  %s1886_s2 = scalar_lea.vmem %s1286_s20, 128 }
 0x51e   :  { %v1617_v21 = vpop.f32.mrb[40].mxu0  ;;  %1680 = vmatpush3.bf16.msra.mxu1 %v1748_v52  ;;  %p1887_p6 = scmp.ne.s32.totalorder %s1286_s20, %s1886_s2  ;;  %p1892_p8 = scmp.lt.s32.totalorder %s1886_s2, %s1886_s2 }
 0x51f   :  { %v910_v22 = vpop.f32.mrb[41].mxu0  ;;  %1681 = vmatprep.subr.bf16.mxu1 %v1926_v49 }
 0x520   :  { %v1618_v39 = vpop.f32.mrb[42].mxu0  ;;  %p1893_p9 = por %p1892_p8, %p1891_p7 }
 0x521   :  { %v946_v40 = vpack.c.bf16 %v1618_v39, %v1617_v21  ;;  %v913_v41 = vpop.f32.mrb[43].mxu0 }
 0x522   :  { %v945_v42 = vpack.c.bf16 %v913_v41, %v910_v22  ;;  %1682 = vmatpush3.bf16.msra.mxu1 %v1749_v53  ;;  %v1340_v41 = vld [vmem:[%s2195_s10] ss:$0 sm:$0xff]  ;;  %p1894_p10 = pnand %p1893_p9, %p1887_p6 }
 0x523   :  { %1683 = vmatprep.subr.bf16.mxu1 %v1926_v49 }
 0x524   :  { %1647 = vmatprep.mubr.bf16.mxu1 %v945_v42 }
 0x525   :  { %1648 = vmatmul.mubr.bf16.gmra.mrb[40].mxu1 %v946_v40 }
 0x526   :  { %v1621_v43 = vpop.f32.mrb[44].mxu0  ;;  %1684 = vmatpush3.bf16.msra.mxu1 %v1750_v54 }
 0x527   :  { %v926_v44 = vpop.f32.mrb[45].mxu0  ;;  %1685 = vmatprep.subr.bf16.mxu1 %v1926_v49 }
 0x528   :  { %v1622_v45 = vpop.f32.mrb[46].mxu0 }
 0x529   :  { %v948_v46 = vpack.c.bf16 %v1622_v45, %v1621_v43  ;;  %v929_v47 = vpop.f32.mrb[47].mxu0 }
 0x52a   :  { %v947_v48 = vpack.c.bf16 %v929_v47, %v926_v44  ;;  %1686 = vmatpush3.bf16.msra.mxu1 %v1751_v56 }
 0x52b   :  { %1687 = vmatprep.subr.bf16.mxu1 %v1926_v49 }
 0x52c   :  { %1651 = vmatprep.mubr.bf16.mxu1 %v947_v48 }
 0x52d   :  { %1652 = vmatmul.mubr.bf16.gmra.mrb[44].mxu1 %v948_v46 }
 0x52e   :  { %1691 = vmatprep.mubr.msk.bf16.mxu1 %vm1927_vm0, %v1926_v49  ;;  %1688 = vmatpush3.bf16.msra.mxu1 %v1752_v55 }
 0x52f   :  { %1689 = vmatprep.subr.bf16.mxu1 %v1926_v49 }
 0x532   :  { %1690 = vmatpush3.bf16.msra.mxu1 %v1753_v20 }
 0x5e8   :  { %v1641_v57 = vpop.f32.mrb[32].mxu1 }
 0x5e9   :  { %v1054_v59 = vpop.f32.mrb[33].mxu1  ;;  %v1063_v61 = vadd.f32 %v1641_v57, %v1331_v58 }
 0x5ea   :  { %v1642_v60 = vpop.f32.mrb[34].mxu1  ;;  %v1055_v0 = vadd.f32 %v1331_v58, %v1054_v59 }
 0x5eb   :  { %v1066_v62 = vadd.f32 %v1642_v60, %v1331_v58  ;;  %v1057_v63 = vpop.f32.mrb[35].mxu1 }
 0x5ec   :  { %v1058_v1 = vadd.f32 %v1331_v58, %v1057_v63 }
 0x5ed   :  { %v1118_v2 = vpack.c.bf16 %v1066_v62, %v1063_v61 }
 0x5ee   :  { %v1117_v3 = vpack.c.bf16 %v1058_v1, %v1055_v0 }
 0x5f0   :  { %v1645_v5 = vpop.f32.mrb[36].mxu1  ;;  %1656 = vmatpush3.bf16.msra.mxu0 %v1117_v3 }
 0x5f1   :  { %v1070_v4 = vpop.f32.mrb[37].mxu1  ;;  %1657 = vmatprep.subr.bf16.mxu0 %v1926_v49  ;;  %v1079_v7 = vadd.f32 %v1645_v5, %v1331_v58 }
 0x5f2   :  { %v1646_v6 = vpop.f32.mrb[38].mxu1  ;;  %v1071_v10 = vadd.f32 %v1331_v58, %v1070_v4 }
 0x5f3   :  { %v1082_v8 = vadd.f32 %v1646_v6, %v1331_v58  ;;  %v1073_v9 = vpop.f32.mrb[39].mxu1 }
 0x5f4   :  { %v1074_v11 = vadd.f32 %v1331_v58, %v1073_v9  ;;  %1658 = vmatpush3.bf16.msra.mxu0 %v1118_v2 }
 0x5f5   :  { %v1120_v12 = vpack.c.bf16 %v1082_v8, %v1079_v7  ;;  %1659 = vmatprep.subr.bf16.mxu0 %v1926_v49 }
 0x5f6   :  { %v1119_v13 = vpack.c.bf16 %v1074_v11, %v1071_v10 }
 0x5f8   :  { %v1649_v16 = vpop.f32.mrb[40].mxu1  ;;  %1660 = vmatpush3.bf16.msra.mxu0 %v1119_v13 }
 0x5f9   :  { %v1086_v17 = vpop.f32.mrb[41].mxu1  ;;  %1661 = vmatprep.subr.bf16.mxu0 %v1926_v49  ;;  %v1095_v24 = vadd.f32 %v1649_v16, %v1331_v58 }
 0x5fa   :  { %v1650_v23 = vpop.f32.mrb[42].mxu1  ;;  %v1087_v27 = vadd.f32 %v1331_v58, %v1086_v17 }
 0x5fb   :  { %v1098_v25 = vadd.f32 %v1650_v23, %v1331_v58  ;;  %v1089_v26 = vpop.f32.mrb[43].mxu1 }
 0x5fc   :  { %v1090_v28 = vadd.f32 %v1331_v58, %v1089_v26  ;;  %1662 = vmatpush3.bf16.msra.mxu0 %v1120_v12 }
 0x5fd   :  { %v1122_v29 = vpack.c.bf16 %v1098_v25, %v1095_v24  ;;  %1663 = vmatprep.subr.bf16.mxu0 %v1926_v49 }
 0x5fe   :  { %v1121_v30 = vpack.c.bf16 %v1090_v28, %v1087_v27 }
 0x600   :  { %v1653_v31 = vpop.f32.mrb[44].mxu1  ;;  %1664 = vmatpush3.bf16.msra.mxu0 %v1121_v30 }
 0x601   :  { %v1102_v32 = vpop.f32.mrb[45].mxu1  ;;  %1665 = vmatprep.subr.bf16.mxu0 %v1926_v49  ;;  %v1111_v34 = vadd.f32 %v1653_v31, %v1331_v58 }
 0x602   :  { %v1654_v33 = vpop.f32.mrb[46].mxu1  ;;  %v1103_v36 = vadd.f32 %v1331_v58, %v1102_v32 }
 0x603   :  { %v1114_v35 = vadd.f32 %v1654_v33, %v1331_v58  ;;  %v1105_v14 = vpop.f32.mrb[47].mxu1 }
 0x604   :  { %v1106_v15 = vadd.f32 %v1331_v58, %v1105_v14  ;;  %1666 = vmatpush3.bf16.msra.mxu0 %v1122_v29 }
 0x605   :  { %v1124_v18 = vpack.c.bf16 %v1114_v35, %v1111_v34  ;;  %1667 = vmatprep.subr.bf16.mxu0 %v1926_v49 }
 0x606   :  { %v1123_v19 = vpack.c.bf16 %v1106_v15, %v1103_v36 }
 0x608   :  { %1668 = vmatpush3.bf16.msra.mxu0 %v1123_v19 }
 0x609   :  { %1669 = vmatprep.subr.bf16.mxu0 %v1926_v49 }
 0x60c   :  { %1670 = vmatpush3.bf16.msra.mxu0 %v1124_v18 }
 0x60f   :  { %1672 = vmatmul.mubr.bf16.vlgmr.msra.gmra.mrb[48].mxu0 %v1125_v37 }
 0x6e2   :  { %v1160_v38 = vpop.f32.mrb[48].mxu0 }
 0x6e3   :  { %v1166_v21 = vpack.c.bf16 %v1160_v38, %v1160_v38  ;;  %v1673_v22 = vpop.f32.mrb[49].mxu0 }
 0x6e4   :  { %v1163_v39 = vpop.f32.mrb[50].mxu0 }
 0x6e5   :  { %v1674_v40 = vpop.f32.mrb[51].mxu0  ;;  %1692 = vmatmul.mubr.bf16.vlgmr.msra.gmra.mrb[48].mxu1 %v1166_v21 }
 0x7b8   :  { %v1272_v42 = vpop.f32.mrb[48].mxu1 }
 0x7b9   :  { %v1273_v43 = vadd.f32 %v1340_v41, %v1272_v42  ;;  %v1693_v44 = vpop.f32.mrb[49].mxu1 }
 0x7ba   :  { %v1275_v45 = vpop.f32.mrb[50].mxu1 }
 0x7bb   :  { %1278 = vst [vmem:[#allocation13] sm:$0xff] %v1273_v43  ;;  %v1694_v46 = vpop.f32.mrb[51].mxu1 }
 0x7bc   :  { %1897 = shalt.err (!%p1894_p10)
}
 0x7bd   :  { %s1898_s10 = scalar_lea.hbm %s2196_s11, 128 }
 0x7be   :  { %p1899_p11 = scmp.ne.s32.totalorder %s2196_s11, %s1898_s10  ;;  %p1902_p12 = scmp.lt.u32.totalorder %s1898_s10, %s2196_s11 }
 0x7c0   :  { %p1904_p13 = pnand %p1902_p12, %p1899_p11 }
 0x7c2   :  { %1907 = shalt.err (!%p1904_p13)
}
 0x7c3   :  { %1288 = dma.vmem_to_hbm [thread:$0]  %s1286_s20, 128, %s2196_s11, [#allocation4]  }
 0x7c4   :  { %1916 = dma.done.wait [#allocation4], 128  }
 0x7c5   :  { %1917 = vsyncadd [#allocation4], 4294967168 }
 0x7c6   :  { %1292 = vsyncpa [#allocation3], 1 }
 0x7c7   :  { %1293 = vsyncpa [#allocation6], 1 }
 0x7c8   :  { %1294 = vsyncpa [#allocation9], 1 }
 0x7c9   :  { %1295 = vsyncpa [#allocation12], 1 }
 0x7ca   :  { %1296 = vsyncpa [#allocation4], 1 }

</bundles_post_ra>
